<compile_context>
chip_gen: v7x
topology: tpu7x:2x2x1
jax: 0.10.0
libtpu: 0.0.40
codegen_flags: <defaults>
</compile_context>

<pallas_src>
from math import gcd

import jax
import jax.numpy as jnp
from jax.experimental import pallas as pl
from jax.experimental.pallas import tpu as pltpu


def _lcm(a, b):
    return a * b // gcd(a, b)


def _make_dytanh_kernel(compute_dtype):
    def kernel(x_ref, p_ref, o_ref):
        # x_ref: (TR, W) tile of the flattened input.
        # p_ref: (3, W) packed params, rows = [scale, alpha, shift].
        x = x_ref[...].astype(compute_dtype)
        scale = p_ref[0:1, :]
        alpha = p_ref[1:2, :]
        shift = p_ref[2:3, :]
        o_ref[...] = (scale * jnp.tanh(alpha * x) + shift).astype(o_ref.dtype)
    return kernel


def _dytanh_ref(x, scale, alpha, shift, num_groups):
    """Pure-JAX reference (also the tiny-input fast path)."""
    B, S, E = x.shape
    gs = E // num_groups
    xg = x.reshape(B, S, num_groups, gs)
    s = scale.reshape(1, 1, num_groups, 1).astype(jnp.float32)
    a = alpha.reshape(1, 1, num_groups, 1).astype(jnp.float32)
    h = shift.reshape(1, 1, num_groups, 1).astype(jnp.float32)
    out = s * jnp.tanh(a * xg.astype(jnp.float32)) + h
    return out.reshape(B, S, E).astype(x.dtype)


def dytanh_group(x, scale, alpha, shift, num_groups, *,
                 force_pallas=False, block_bytes=4 << 20,
                 compute_dtype=jnp.float32):
    """x: (B, S, E); scale/alpha/shift: per-group params (num_groups,) or (1,1,G,1)."""
    B, S, E = x.shape
    assert E % num_groups == 0, "embed_dim must be divisible by num_groups"
    group_size = E // num_groups
    total = B * S * E
    itemsize = jnp.dtype(x.dtype).itemsize

    # Tiny problems: Pallas custom-call/grid overhead dwarfs the work.
    if (total * itemsize < (64 << 10)) and not force_pallas:
        return _dytanh_ref(x, scale, alpha, shift, num_groups)

    # Lane-dense width: smallest multiple of both E (param period) and 128
    # (vreg lanes).  If total isn't an exact multiple (possible only when
    # E % 128 != 0 and B*S is "odd"), fall back to W = E — never pad.
    w_base = _lcm(E, 128)
    W = w_base if (total % w_base == 0) else E
    rows = total // W

    # Per-channel params tiled across the W-wide lane layout, packed into a
    # single (3, W) block: rows = [scale, alpha, shift].
    def chan(p):
        return jnp.tile(jnp.repeat(p.reshape(num_groups), group_size), W // E)

    params = jnp.stack([chan(scale), chan(alpha), chan(shift)]
                       ).astype(compute_dtype)

    # Row tile: largest multiple-of-8 block within the byte budget, capped so
    # the grid has >= 2 steps (v7x megacore sharding).  Ragged last block is
    # handled by Pallas (masked writes) — no physical padding.
    if rows <= 8:
        tr = rows                                   # single full-extent block
    else:
        tr = max(8, (block_bytes // (W * itemsize)) // 8 * 8)
        half_rows = pl.cdiv(rows, 2)
        tr = min(tr, pl.cdiv(half_rows, 8) * 8)

    grid = (pl.cdiv(rows, tr),)
    x2d = x.reshape(rows, W)

    out2d = pl.pallas_call(
        _make_dytanh_kernel(compute_dtype),
        out_shape=jax.ShapeDtypeStruct((rows, W), x.dtype),
        grid_spec=pltpu.PrefetchScalarGridSpec(
            num_scalar_prefetch=0,
            grid=grid,
            in_specs=[
                pl.BlockSpec((tr, W), lambda i: (i, 0)),
                pl.BlockSpec((3, W), lambda i: (0, 0)),
            ],
            out_specs=pl.BlockSpec((tr, W), lambda i: (i, 0)),
        ),
        compiler_params=pltpu.CompilerParams(
            dimension_semantics=("parallel",),
            vmem_limit_bytes=32 << 20),
        cost_estimate=pl.CostEstimate(
            flops=3 * total,
            transcendentals=total,
            bytes_accessed=2 * total * itemsize + 3 * W * 4),
    )(x2d, params)

    return out2d.reshape(B, S, E)


if __name__ == "__main__":
    key = jax.random.PRNGKey(0)
    k_x, k_scale, k_shift, k_alpha, k_x2, k_x3, k_x4 = jax.random.split(key, 7)

    # Module config (matches __init__): embed_dim=32, num_groups=4.
    embed_dim, num_groups = 32, 4
    mean, std = 0.1, 0.001
    B, S = 2, 8

    # Deterministic parameter init: randn * std + mean, per group.
    scale = jax.random.normal(k_scale, (num_groups,), jnp.float32) * std + mean
    shift = jax.random.normal(k_shift, (num_groups,), jnp.float32) * std + mean
    alpha = jax.random.normal(k_alpha, (num_groups,), jnp.float32) * std + mean

    # 1) Small, module-sized input: force the Pallas path so the kernel runs.
    x = jax.random.normal(k_x, (B, S, embed_dim), jnp.float32)
    out = dytanh_group(x, scale, alpha, shift, num_groups, force_pallas=True)
    out = jax.block_until_ready(out)
    ref = _dytanh_ref(x, scale, alpha, shift, num_groups)
    assert jnp.allclose(out, ref, atol=1e-6, rtol=1e-6)

    # 2) Moderate input: lane-dense W=256, 2-step parallel grid, no padding.
    B2, S2, E2 = 4, 1000, 256
    x2 = jax.random.normal(k_x2, (B2, S2, E2), jnp.float32)
    out2 = dytanh_group(x2, scale, alpha, shift, num_groups)
    out2 = jax.block_until_ready(out2)
    ref2 = _dytanh_ref(x2, scale, alpha, shift, num_groups)
    assert jnp.allclose(out2, ref2, atol=1e-6, rtol=1e-6)

    # 3) Ragged rows: exercises the masked partial last block (21 rows, tr=16).
    B3, S3, E3 = 3, 7, 256
    x3 = jax.random.normal(k_x3, (B3, S3, E3), jnp.float32)
    out3 = dytanh_group(x3, scale, alpha, shift, num_groups, force_pallas=True)
    out3 = jax.block_until_ready(out3)
    ref3 = _dytanh_ref(x3, scale, alpha, shift, num_groups)
    assert jnp.allclose(out3, ref3, atol=1e-6, rtol=1e-6)

    # 4) Width fallback: total not divisible by lcm(E,128) -> W = E path.
    B4, S4, E4 = 1, 5, 32
    x4 = jax.random.normal(k_x4, (B4, S4, E4), jnp.float32)
    out4 = dytanh_group(x4, scale, alpha, shift, num_groups, force_pallas=True)
    out4 = jax.block_until_ready(out4)
    ref4 = _dytanh_ref(x4, scale, alpha, shift, num_groups)
    assert jnp.allclose(out4, ref4, atol=1e-6, rtol=1e-6)

    print("KERNEL_OK")
</pallas_src>

<mosaic_0001>
module attributes {stable_mosaic.version = 11 : i64} {
  func.func @kernel(%arg0: i32, %arg1: memref<4x128xf32, #tpu.memory_space<vmem>>, %arg2: memref<3x128xf32, #tpu.memory_space<vmem>>, %arg3: memref<4x128xf32, #tpu.memory_space<vmem>>) attributes {dimension_semantics = [#tpu.dimension_semantics<parallel>], iteration_bounds = array<i64: 1>, scalar_prefetch = 0 : i64, scratch_operands = 0 : i64, tpu.core_type = #tpu.core_type<tc>, window_params = [{transform_indices = @transform_0, window_bounds = array<i64: 4, 128>}, {pipeline_mode = #tpu.pipeline_mode<synchronous>, transform_indices = @transform_1, window_bounds = array<i64: 3, 128>}, {transform_indices = @transform_2, window_bounds = array<i64: 4, 128>}]} {
    %c0 = arith.constant 0 : index
    %c0_0 = arith.constant 0 : index
    %0 = vector.load %arg1[%c0, %c0_0] : memref<4x128xf32, #tpu.memory_space<vmem>>, vector<4x128xf32>
    %c0_1 = arith.constant 0 : index
    %c0_2 = arith.constant 0 : index
    %1 = vector.load %arg2[%c0_1, %c0_2] : memref<3x128xf32, #tpu.memory_space<vmem>>, vector<1x128xf32>
    %c1 = arith.constant 1 : index
    %c0_3 = arith.constant 0 : index
    %2 = vector.load %arg2[%c1, %c0_3] : memref<3x128xf32, #tpu.memory_space<vmem>>, vector<1x128xf32>
    %c2 = arith.constant 2 : index
    %c0_4 = arith.constant 0 : index
    %3 = vector.load %arg2[%c2, %c0_4] : memref<3x128xf32, #tpu.memory_space<vmem>>, vector<1x128xf32>
    %4 = vector.broadcast %2 : vector<1x128xf32> to vector<4x128xf32>
    %5 = arith.mulf %4, %0 : vector<4x128xf32>
    %6 = math.tanh %5 : vector<4x128xf32>
    %7 = vector.broadcast %1 : vector<1x128xf32> to vector<4x128xf32>
    %8 = arith.mulf %7, %6 : vector<4x128xf32>
    %9 = vector.broadcast %3 : vector<1x128xf32> to vector<4x128xf32>
    %10 = arith.addf %8, %9 : vector<4x128xf32>
    %c0_5 = arith.constant 0 : index
    %c0_6 = arith.constant 0 : index
    %11 = vector.load %arg3[%c0_5, %c0_6] : memref<4x128xf32, #tpu.memory_space<vmem>>, vector<4x128xf32>
    tpu.vector_store %arg3[%c0_5, %c0_6], %10 {strides = array<i32>} : memref<4x128xf32, #tpu.memory_space<vmem>>, vector<4x128xf32>,
    return
  }
  func.func @transform_0(%arg0: i32) -> (i32, i32) {
    %c0_i32 = arith.constant 0 : i32
    %c0_i32_0 = arith.constant 0 : i32
    return %arg0, %c0_i32 : i32, i32
  }
  func.func @transform_1(%arg0: i32) -> (i32, i32) {
    %c0_i32 = arith.constant 0 : i32
    %c0_i32_0 = arith.constant 0 : i32
    %c0_i32_1 = arith.constant 0 : i32
    return %c0_i32, %c0_i32_0 : i32, i32
  }
  func.func @transform_2(%arg0: i32) -> (i32, i32) {
    %c0_i32 = arith.constant 0 : i32
    %c0_i32_0 = arith.constant 0 : i32
    return %arg0, %c0_i32 : i32, i32
  }
}

</mosaic_0001>

<bundles_post_ra>
// kernel: tpu_custom_call.1
= control target key start
LH: loop header
LB: loop body
LE: loop exit
PB: predicated region body
PF: predicated region fallthrough
CT: control target
= control target key end

     0   :  { %7 = vsyncpa [#allocation3], 0  ;;  %s207_s0 = inlined_call_operand.hbm [shape: f32[4,128], index: 0, kind: input, shape index: {}]   ;;  %s208_s1 = inlined_call_operand.hbm [shape: f32[3,128], index: 1, kind: input, shape index: {}]   ;;  %s209_s2 = inlined_call_operand.hbm [shape: f32[4,128], index: 2, kind: output, shape index: {}]  }
   0x1   :  { %8 = vsyncpa [#allocation6], 0 }
   0x2   :  { %9 = vsyncpa [#allocation4], 0  ;;  %s153_s9 = smov [#allocation2]   ;;  %s154_s11 = smov [#allocation5]  }
   0x3   :  { %s16_s10 = sshll.u32 %s153_s9, 4  ;;  %s26_s12 = sshll.u32 %s154_s11, 4  ;;  %s17_s10 = int_to_ptr.vmem [resolvable:$true] %s16_s10  ;;  %s27_s12 = int_to_ptr.vmem [resolvable:$true] %s26_s12 }
   0x4   :  { %s81_s15 = scalar_lea.hbm %s207_s0, 64 }
   0x5   :  { %p82_p0 = scmp.ne.s32.totalorder %s207_s0, %s81_s15  ;;  %p85_p1 = scmp.lt.u32.totalorder %s81_s15, %s207_s0 }
   0x7   :  { %p87_p2 = pnand %p85_p1, %p82_p0 }
   0x9   :  { %90 = shalt.err (!%p87_p2)
}
   0xa   :  { %s91_s20 = scalar_lea.vmem %s17_s10, 64  ;;  %p96_p4 = scmp.lt.s32.totalorder %s17_s10, %s17_s10 }
   0xb   :  { %p92_p3 = scmp.ne.s32.totalorder %s17_s10, %s91_s20  ;;  %p97_p5 = scmp.lt.s32.totalorder %s91_s20, %s91_s20 }
   0xd   :  { %p98_p6 = por %p97_p5, %p96_p4 }
   0xf   :  { %p99_p7 = pnand %p98_p6, %p92_p3 }
  0x11   :  { %102 = shalt.err (!%p99_p7)
}
  0x12   :  { %19 = dma.hbm_to_vmem [thread:$0]  %s207_s0, 64, %s17_s10, [#allocation3]  }
  0x13   :  { %s103_s25 = scalar_lea.hbm %s208_s1, 64 }
  0x14   :  { %p104_p8 = scmp.ne.s32.totalorder %s208_s1, %s103_s25  ;;  %p107_p9 = scmp.lt.u32.totalorder %s103_s25, %s208_s1 }
  0x16   :  { %p109_p10 = pnand %p107_p9, %p104_p8 }
  0x18   :  { %112 = shalt.err (!%p109_p10)
}
  0x19   :  { %s113_s30 = scalar_lea.vmem %s27_s12, 64  ;;  %p118_p12 = scmp.lt.s32.totalorder %s27_s12, %s27_s12 }
  0x1a   :  { %p114_p11 = scmp.ne.s32.totalorder %s27_s12, %s113_s30  ;;  %p119_p13 = scmp.lt.s32.totalorder %s113_s30, %s113_s30 }
  0x1c   :  { %p120_p0 = por %p119_p13, %p118_p12 }
  0x1e   :  { %p121_p1 = pnand %p120_p0, %p114_p11 }
  0x20   :  { %124 = shalt.err (!%p121_p1)
}
  0x21   :  { %29 = dma.hbm_to_vmem [thread:$0]  %s208_s1, 64, %s27_s12, [#allocation6]  }
  0x22   :  { %147 = dma.done.wait [#allocation3], 64  }
  0x23   :  { %148 = vsyncadd [#allocation3], 4294967232 }
  0x24   :  { %149 = dma.done.wait [#allocation6], 64  }
  0x25   :  { %150 = vsyncadd [#allocation6], 4294967232  ;;  %v36_v0 = vld [vmem:[#allocation2] sm:$0xf]  ;;  %v73_v1 = vld [vmem:[#allocation5 + $0x1] ss:$0 sm:$0xff] }
  0x26   :  { %v44_v2 = vmul.f32 %v73_v1, %v36_v0  ;;  %v74_v3 = vld [vmem:[#allocation5] ss:$0 sm:$0xff]  ;;  %v75_v5 = vld [vmem:[#allocation5 + $0x2] ss:$0 sm:$0xff]  ;;  %s155_s4 = smov [#allocation7]  }
  0x27   :  { %s63_s5 = sshll.u32 %s155_s4, 4  ;;  %s64_s5 = int_to_ptr.vmem [resolvable:$true] %s63_s5 }
  0x28   :  { %79 = vtanh.f32 %v44_v2  ;;  %s125_s6 = scalar_lea.vmem %s64_s5, 64  ;;  %p130_p3 = scmp.lt.s32.totalorder %s64_s5, %s64_s5 }
  0x29   :  { %p126_p2 = scmp.ne.s32.totalorder %s64_s5, %s125_s6  ;;  %p131_p4 = scmp.lt.s32.totalorder %s125_s6, %s125_s6 }
  0x2b   :  { %p132_p5 = por %p131_p4, %p130_p3 }
  0x2d   :  { %p133_p6 = pnand %p132_p5, %p126_p2 }
  0x32   :  { %v80_v4 = vpop.eup %79 }
  0x33   :  { %v50_v6 = vmul.f32 %v80_v4, %v74_v3 }
  0x35   :  { %v55_v7 = vadd.f32 %v75_v5, %v50_v6 }
  0x37   :  { %56 = vst [vmem:[#allocation7] sm:$0xf] %v55_v7 }
  0x38   :  { %136 = shalt.err (!%p133_p6)
}
  0x39   :  { %s137_s8 = scalar_lea.hbm %s209_s2, 64 }
  0x3a   :  { %p138_p7 = scmp.ne.s32.totalorder %s209_s2, %s137_s8  ;;  %p141_p8 = scmp.lt.u32.totalorder %s137_s8, %s209_s2 }
  0x3c   :  { %p143_p9 = pnand %p141_p8, %p138_p7 }
  0x3e   :  { %146 = shalt.err (!%p143_p9)
}
  0x3f   :  { %66 = dma.vmem_to_hbm [thread:$0]  %s64_s5, 64, %s209_s2, [#allocation4]  }
  0x40   :  { %151 = dma.done.wait [#allocation4], 64  }
  0x41   :  { %152 = vsyncadd [#allocation4], 4294967232 }
  0x42   :  { %70 = vsyncpa [#allocation3], 1 }
  0x43   :  { %71 = vsyncpa [#allocation6], 1 }
  0x44   :  { %72 = vsyncpa [#allocation4], 1 }

</bundles_post_ra>
